<compile_context>
chip_gen: v6e
topology: v6e:2x2x1
jax: 0.10.0
libtpu: 0.0.40
codegen_flags: <defaults>
</compile_context>

<pallas_src>
import functools
import math

import jax
import jax.numpy as jnp
from jax.experimental import pallas as pl
from jax.experimental.pallas import tpu as pltpu


def _mhsa_kernel(x_ref, w_ref, b_ref, out_ref, attn_ref, *,
                 head_block, head_dim, scale):
    """One grid step = one batch element x one block of `head_block` heads.

    x_ref:    (1, S, E)
    w_ref:    (1, E, 3*W) fused [Wq | Wk | Wv] columns for this head block (W = head_block*head_dim)
    b_ref:    (1, 1, 3*W)
    out_ref:  (1, S, W)
    attn_ref: (1, head_block, S, S)
    """
    hb, dh = head_block, head_dim
    w_cols = hb * dh

    x = x_ref[0]                                                      # (S, E)

    # Single fused QKV projection for this head block (one MXU push, fp32 accum).
    qkv = jnp.dot(x, w_ref[0], preferred_element_type=jnp.float32) + b_ref[0]   # (S, 3W) f32

    def split(base):
        # Static lane slices stacked along a new leading (head) axis -> (hb, S, dh).
        return jnp.stack(
            [qkv[:, base + h * dh: base + (h + 1) * dh] for h in range(hb)],
            axis=0)

    inv_scale = 1.0 / scale
    q = split(0) * inv_scale                                          # fold 1/sqrt(E) into q
    k = split(w_cols)
    v = split(2 * w_cols)

    # Batched attention over the head axis (leading batch dim -> clean dot_general).
    scores = jnp.einsum('hqd,hkd->hqk', q, k,
                        preferred_element_type=jnp.float32)           # (hb, S, S)
    scores = scores - jnp.max(scores, axis=-1, keepdims=True)         # stable softmax
    p = jnp.exp(scores)
    p = p * pl.reciprocal(jnp.sum(p, axis=-1, keepdims=True), approx=True)

    # Whole-slab store of the attention probabilities for this head block.
    attn_ref[0] = p.astype(attn_ref.dtype)                            # (hb, S, S)

    o = jnp.einsum('hqk,hkd->hqd', p, v,
                   preferred_element_type=jnp.float32)                # (hb, S, dh)

    # Merge heads back along lanes and store the (S, W) slab once (lane-dense).
    merged = jnp.concatenate([o[h] for h in range(hb)], axis=-1) if hb > 1 else o[0]
    out_ref[0] = merged.astype(out_ref.dtype)


def mhsa_forward(x, wq, bq, wk, bk, wv, bv, num_heads, *,
                 head_block=None, compute_dtype=None):
    """Forward pass matching the PyTorch MultiheadedSelfAttention module.

    head_block: heads processed per grid step (default: all). For large models keep
                head_block*head_dim a multiple of 128 lanes (or == E).
    compute_dtype: e.g. jnp.bfloat16 on v6e/v7x to hit MXU peak and halve DMA bytes;
                   accumulation and softmax remain fp32 inside the kernel.
    """
    B, S, E = x.shape
    assert E % num_heads == 0, "embed dim must be divisible by num_heads"
    Dh = E // num_heads
    if head_block is None:
        head_block = num_heads
    assert num_heads % head_block == 0, "num_heads must be divisible by head_block"
    nhb = num_heads // head_block
    W = head_block * Dh
    # Lane-tiling: per-step projection/out width must be the full row or a 128-multiple.
    assert W == E or W % 128 == 0, \
        "head_block*head_dim must equal embed dim or be a multiple of 128"

    # Module uses sqrt(embedded_vec_dim), NOT the conventional sqrt(head_dim). Keep it.
    scale = math.sqrt(float(E))
    out_dtype = x.dtype

    # nn.Linear computes x @ W.T + b. Pre-transpose once and pack per head block:
    # w_all[j] = [Wq.T[:, block j] | Wk.T[:, block j] | Wv.T[:, block j]]  -> (E, 3W)
    wq_t, wk_t, wv_t = wq.T, wk.T, wv.T
    w_blks, b_blks = [], []
    for j in range(nhb):
        lo, hi = j * W, (j + 1) * W
        w_blks.append(jnp.concatenate(
            [wq_t[:, lo:hi], wk_t[:, lo:hi], wv_t[:, lo:hi]], axis=1))
        b_blks.append(jnp.concatenate([bq[lo:hi], bk[lo:hi], bv[lo:hi]], axis=0))
    w_all = jnp.stack(w_blks, axis=0)                 # (nhb, E, 3W)
    b_all = jnp.stack(b_blks, axis=0)[:, None, :]     # (nhb, 1, 3W), kept fp32

    if compute_dtype is not None:
        x = x.astype(compute_dtype)
        w_all = w_all.astype(compute_dtype)

    kernel = functools.partial(_mhsa_kernel, head_block=head_block,
                               head_dim=Dh, scale=scale)

    out, attn = pl.pallas_call(
        kernel,
        out_shape=(jax.ShapeDtypeStruct((B, S, E), out_dtype),
                   jax.ShapeDtypeStruct((B, num_heads, S, S), out_dtype)),
        grid_spec=pltpu.PrefetchScalarGridSpec(
            num_scalar_prefetch=0,
            grid=(B, nhb),
            in_specs=[
                pl.BlockSpec((1, S, E), lambda b, j: (b, 0, 0)),          # x
                pl.BlockSpec((1, E, 3 * W), lambda b, j: (j, 0, 0)),      # fused QKV weights
                pl.BlockSpec((1, 1, 3 * W), lambda b, j: (j, 0, 0)),      # fused QKV bias
            ],
            out_specs=[
                pl.BlockSpec((1, S, W), lambda b, j: (b, 0, j)),                 # out columns
                pl.BlockSpec((1, head_block, S, S), lambda b, j: (b, j, 0, 0)),  # attn slab
            ],
        ),
        compiler_params=pltpu.CompilerParams(
            dimension_semantics=("parallel", "parallel")),
    )(x, w_all, b_all)
    return out, attn


def _reference(x, wq, bq, wk, bk, wv, bv, num_heads):
    # Pure-JAX reference of the intended forward pass.
    B, S, E = x.shape
    Dh = E // num_heads
    scale = math.sqrt(float(E))
    q = x @ wq.T + bq
    k = x @ wk.T + bk
    v = x @ wv.T + bv
    def split(t):
        return t.reshape(B, S, num_heads, Dh).transpose(0, 2, 1, 3)   # (B,H,S,Dh)
    q, k, v = split(q), split(k), split(v)
    scores = jnp.einsum("bhqd,bhkd->bhqk", q, k) / scale
    attn = jax.nn.softmax(scores, axis=-1)
    out = jnp.einsum("bhqk,bhkd->bhqd", attn, v)
    out = out.transpose(0, 2, 1, 3).reshape(B, S, E)
    return out, attn


if __name__ == "__main__":
    # Small shapes consistent with the module: batch=2, seq=8, embed=32, heads=4.
    B, S, E, H = 2, 8, 32, 4
    drop_rate = 0.1  # dropout is identity in this (eval-mode) kernel

    key = jax.random.PRNGKey(0)
    kx, k1, k2, k3, k4, k5, k6 = jax.random.split(key, 7)
    x = jax.random.normal(kx, (B, S, E), dtype=jnp.float32)

    lim = 1.0 / math.sqrt(E)
    wq = jax.random.uniform(k1, (E, E), minval=-lim, maxval=lim, dtype=jnp.float32)
    bq = jax.random.uniform(k2, (E,), minval=-lim, maxval=lim, dtype=jnp.float32)
    wk = jax.random.uniform(k3, (E, E), minval=-lim, maxval=lim, dtype=jnp.float32)
    bk = jax.random.uniform(k4, (E,), minval=-lim, maxval=lim, dtype=jnp.float32)
    wv = jax.random.uniform(k5, (E, E), minval=-lim, maxval=lim, dtype=jnp.float32)
    bv = jax.random.uniform(k6, (E,), minval=-lim, maxval=lim, dtype=jnp.float32)

    out, attn = mhsa_forward(x, wq, bq, wk, bk, wv, bv, H)
    out = jax.block_until_ready(out)
    attn = jax.block_until_ready(attn)

    ref_out, ref_attn = _reference(x, wq, bq, wk, bk, wv, bv, H)
    assert out.shape == (B, S, E) and attn.shape == (B, H, S, S)
    # Tolerance slightly relaxed vs fp32-exact because the softmax denominator uses
    # the EUP approximate reciprocal (pl.reciprocal(approx=True)).
    assert jnp.allclose(out, ref_out, atol=2e-3, rtol=2e-3)
    assert jnp.allclose(attn, ref_attn, atol=2e-3, rtol=2e-3)

    print("KERNEL_OK")
</pallas_src>

<mosaic_0001>
module attributes {stable_mosaic.version = 11 : i64} {
  func.func @_mhsa_kernel(%arg0: i32, %arg1: i32, %arg2: memref<1x8x32xf32, #tpu.memory_space<vmem>>, %arg3: memref<1x32x96xf32, #tpu.memory_space<vmem>>, %arg4: memref<1x1x96xf32, #tpu.memory_space<vmem>>, %arg5: memref<1x8x32xf32, #tpu.memory_space<vmem>>, %arg6: memref<1x4x8x8xf32, #tpu.memory_space<vmem>>) attributes {dimension_semantics = [#tpu.dimension_semantics<parallel>, #tpu.dimension_semantics<parallel>], iteration_bounds = array<i64: 2, 1>, scalar_prefetch = 0 : i64, scratch_operands = 0 : i64, tpu.core_type = #tpu.core_type<tc>, window_params = [{transform_indices = @transform_0, window_bounds = array<i64: 1, 8, 32>}, {transform_indices = @transform_1, window_bounds = array<i64: 1, 32, 96>}, {transform_indices = @transform_2, window_bounds = array<i64: 1, 1, 96>}, {transform_indices = @transform_3, window_bounds = array<i64: 1, 8, 32>}, {transform_indices = @transform_4, window_bounds = array<i64: 1, 4, 8, 8>}]} {
    %c0 = arith.constant 0 : index
    %c0_0 = arith.constant 0 : index
    %c0_1 = arith.constant 0 : index
    %0 = vector.load %arg2[%c0, %c0_0, %c0_1] : memref<1x8x32xf32, #tpu.memory_space<vmem>>, vector<1x8x32xf32>
    %1 = vector.shape_cast %0 : vector<1x8x32xf32> to vector<8x32xf32>
    %c0_2 = arith.constant 0 : index
    %c0_3 = arith.constant 0 : index
    %c0_4 = arith.constant 0 : index
    %2 = vector.load %arg3[%c0_2, %c0_3, %c0_4] : memref<1x32x96xf32, #tpu.memory_space<vmem>>, vector<1x32x96xf32>
    %3 = vector.shape_cast %2 : vector<1x32x96xf32> to vector<32x96xf32>
    %cst = arith.constant dense<0.000000e+00> : vector<8x96xf32>
    %4 = tpu.matmul %1, %3, %cst {dimension_numbers = #tpu.dot_dimension_numbers<[1], [0], [0], [1], [0, 0, 1, 1], [], []>} : vector<8x32xf32>, vector<32x96xf32>, vector<8x96xf32> -> vector<8x96xf32>
    %c0_5 = arith.constant 0 : index
    %c0_6 = arith.constant 0 : index
    %c0_7 = arith.constant 0 : index
    %5 = vector.load %arg4[%c0_5, %c0_6, %c0_7] : memref<1x1x96xf32, #tpu.memory_space<vmem>>, vector<1x1x96xf32>
    %6 = vector.shape_cast %5 : vector<1x1x96xf32> to vector<1x96xf32>
    %7 = vector.broadcast %6 : vector<1x96xf32> to vector<8x96xf32>
    %8 = arith.addf %4, %7 : vector<8x96xf32>
    %9 = vector.extract_strided_slice %8 {offsets = [0, 0], sizes = [8, 8], strides = [1, 1]} : vector<8x96xf32> to vector<8x8xf32>
    %10 = vector.extract_strided_slice %8 {offsets = [0, 8], sizes = [8, 8], strides = [1, 1]} : vector<8x96xf32> to vector<8x8xf32>
    %11 = vector.extract_strided_slice %8 {offsets = [0, 16], sizes = [8, 8], strides = [1, 1]} : vector<8x96xf32> to vector<8x8xf32>
    %12 = vector.extract_strided_slice %8 {offsets = [0, 24], sizes = [8, 8], strides = [1, 1]} : vector<8x96xf32> to vector<8x8xf32>
    %13 = vector.shape_cast %9 : vector<8x8xf32> to vector<1x8x8xf32>
    %14 = vector.shape_cast %10 : vector<8x8xf32> to vector<1x8x8xf32>
    %15 = vector.shape_cast %11 : vector<8x8xf32> to vector<1x8x8xf32>
    %16 = vector.shape_cast %12 : vector<8x8xf32> to vector<1x8x8xf32>
    %17 = tpu.concatenate %13, %14, %15, %16 in 0 : vector<1x8x8xf32>, vector<1x8x8xf32>, vector<1x8x8xf32>, vector<1x8x8xf32> -> vector<4x8x8xf32>
    %cst_8 = arith.constant 0.176776692 : f32
    %18 = vector.broadcast %cst_8 : f32 to vector<4x8x8xf32>
    %19 = arith.mulf %17, %18 : vector<4x8x8xf32>
    %20 = vector.extract_strided_slice %8 {offsets = [0, 32], sizes = [8, 8], strides = [1, 1]} : vector<8x96xf32> to vector<8x8xf32>
    %21 = vector.extract_strided_slice %8 {offsets = [0, 40], sizes = [8, 8], strides = [1, 1]} : vector<8x96xf32> to vector<8x8xf32>
    %22 = vector.extract_strided_slice %8 {offsets = [0, 48], sizes = [8, 8], strides = [1, 1]} : vector<8x96xf32> to vector<8x8xf32>
    %23 = vector.extract_strided_slice %8 {offsets = [0, 56], sizes = [8, 8], strides = [1, 1]} : vector<8x96xf32> to vector<8x8xf32>
    %24 = vector.shape_cast %20 : vector<8x8xf32> to vector<1x8x8xf32>
    %25 = vector.shape_cast %21 : vector<8x8xf32> to vector<1x8x8xf32>
    %26 = vector.shape_cast %22 : vector<8x8xf32> to vector<1x8x8xf32>
    %27 = vector.shape_cast %23 : vector<8x8xf32> to vector<1x8x8xf32>
    %28 = tpu.concatenate %24, %25, %26, %27 in 0 : vector<1x8x8xf32>, vector<1x8x8xf32>, vector<1x8x8xf32>, vector<1x8x8xf32> -> vector<4x8x8xf32>
    %29 = vector.extract_strided_slice %8 {offsets = [0, 64], sizes = [8, 8], strides = [1, 1]} : vector<8x96xf32> to vector<8x8xf32>
    %30 = vector.extract_strided_slice %8 {offsets = [0, 72], sizes = [8, 8], strides = [1, 1]} : vector<8x96xf32> to vector<8x8xf32>
    %31 = vector.extract_strided_slice %8 {offsets = [0, 80], sizes = [8, 8], strides = [1, 1]} : vector<8x96xf32> to vector<8x8xf32>
    %32 = vector.extract_strided_slice %8 {offsets = [0, 88], sizes = [8, 8], strides = [1, 1]} : vector<8x96xf32> to vector<8x8xf32>
    %33 = vector.shape_cast %29 : vector<8x8xf32> to vector<1x8x8xf32>
    %34 = vector.shape_cast %30 : vector<8x8xf32> to vector<1x8x8xf32>
    %35 = vector.shape_cast %31 : vector<8x8xf32> to vector<1x8x8xf32>
    %36 = vector.shape_cast %32 : vector<8x8xf32> to vector<1x8x8xf32>
    %37 = tpu.concatenate %33, %34, %35, %36 in 0 : vector<1x8x8xf32>, vector<1x8x8xf32>, vector<1x8x8xf32>, vector<1x8x8xf32> -> vector<4x8x8xf32>
    "tpu.trace_start"() <{level = 10 : i32, message = "hqd,hkd->hqk"}> : () -> ()
    %cst_9 = arith.constant dense<0.000000e+00> : vector<4x8x8xf32>
    %38 = tpu.matmul %19, %28, %cst_9 {dimension_numbers = #tpu.dot_dimension_numbers<[2], [2], [1], [1], [0, 0, 0, 1, 1, 1], [0], [0]>} : vector<4x8x8xf32>, vector<4x8x8xf32>, vector<4x8x8xf32> -> vector<4x8x8xf32>
    "tpu.trace_stop"() : () -> ()
    %cst_10 = arith.constant dense<0xFF800000> : vector<4x8xf32>
    %39 = vector.multi_reduction <maximumf>, %38, %cst_10 [2] : vector<4x8x8xf32> to vector<4x8xf32>
    %40 = vector.shape_cast %39 : vector<4x8xf32> to vector<4x8x1xf32>
    %41 = vector.broadcast %40 : vector<4x8x1xf32> to vector<4x8x8xf32>
    %42 = arith.subf %38, %41 : vector<4x8x8xf32>
    %43 = math.exp %42 : vector<4x8x8xf32>
    %cst_11 = arith.constant dense<0.000000e+00> : vector<4x8xf32>
    %44 = vector.multi_reduction <add>, %43, %cst_11 [2] : vector<4x8x8xf32> to vector<4x8xf32>
    %45 = vector.shape_cast %44 : vector<4x8xf32> to vector<4x8x1xf32>
    %46 = tpu.reciprocal %45 {approx = true} : vector<4x8x1xf32> -> vector<4x8x1xf32>
    %47 = vector.broadcast %46 : vector<4x8x1xf32> to vector<4x8x8xf32>
    %48 = arith.mulf %43, %47 : vector<4x8x8xf32>
    %c0_12 = arith.constant 0 : index
    %c0_13 = arith.constant 0 : index
    %c0_14 = arith.constant 0 : index
    %c0_15 = arith.constant 0 : index
    %49 = vector.load %arg6[%c0_12, %c0_13, %c0_14, %c0_15] : memref<1x4x8x8xf32, #tpu.memory_space<vmem>>, vector<1x4x8x8xf32>
    %50 = vector.shape_cast %49 : vector<1x4x8x8xf32> to vector<4x8x8xf32>
    %51 = vector.shape_cast %48 : vector<4x8x8xf32> to vector<1x4x8x8xf32>
    tpu.vector_store %arg6[%c0_12, %c0_13, %c0_14, %c0_15], %51 {strides = array<i32>} : memref<1x4x8x8xf32, #tpu.memory_space<vmem>>, vector<1x4x8x8xf32>,
    "tpu.trace_start"() <{level = 10 : i32, message = "hqk,hkd->hqd"}> : () -> ()
    %cst_16 = arith.constant dense<0.000000e+00> : vector<4x8x8xf32>
    %52 = tpu.matmul %48, %37, %cst_16 {dimension_numbers = #tpu.dot_dimension_numbers<[2], [1], [1], [2], [0, 0, 0, 1, 1, 2], [0], [0]>} : vector<4x8x8xf32>, vector<4x8x8xf32>, vector<4x8x8xf32> -> vector<4x8x8xf32>
    "tpu.trace_stop"() : () -> ()
    %53 = vector.extract_strided_slice %52 {offsets = [0, 0, 0], sizes = [1, 8, 8], strides = [1, 1, 1]} : vector<4x8x8xf32> to vector<1x8x8xf32>
    %54 = vector.shape_cast %53 : vector<1x8x8xf32> to vector<8x8xf32>
    %55 = vector.extract_strided_slice %52 {offsets = [1, 0, 0], sizes = [1, 8, 8], strides = [1, 1, 1]} : vector<4x8x8xf32> to vector<1x8x8xf32>
    %56 = vector.shape_cast %55 : vector<1x8x8xf32> to vector<8x8xf32>
    %57 = vector.extract_strided_slice %52 {offsets = [2, 0, 0], sizes = [1, 8, 8], strides = [1, 1, 1]} : vector<4x8x8xf32> to vector<1x8x8xf32>
    %58 = vector.shape_cast %57 : vector<1x8x8xf32> to vector<8x8xf32>
    %59 = vector.extract_strided_slice %52 {offsets = [3, 0, 0], sizes = [1, 8, 8], strides = [1, 1, 1]} : vector<4x8x8xf32> to vector<1x8x8xf32>
    %60 = vector.shape_cast %59 : vector<1x8x8xf32> to vector<8x8xf32>
    %61 = tpu.concatenate %54, %56, %58, %60 in 1 : vector<8x8xf32>, vector<8x8xf32>, vector<8x8xf32>, vector<8x8xf32> -> vector<8x32xf32>
    %c0_17 = arith.constant 0 : index
    %c0_18 = arith.constant 0 : index
    %c0_19 = arith.constant 0 : index
    %62 = vector.load %arg5[%c0_17, %c0_18, %c0_19] : memref<1x8x32xf32, #tpu.memory_space<vmem>>, vector<1x8x32xf32>
    %63 = vector.shape_cast %62 : vector<1x8x32xf32> to vector<8x32xf32>
    %64 = vector.shape_cast %61 : vector<8x32xf32> to vector<1x8x32xf32>
    tpu.vector_store %arg5[%c0_17, %c0_18, %c0_19], %64 {strides = array<i32>} : memref<1x8x32xf32, #tpu.memory_space<vmem>>, vector<1x8x32xf32>,
    return
  }
  func.func @transform_0(%arg0: i32, %arg1: i32) -> (i32, i32, i32) {
    %c0_i32 = arith.constant 0 : i32
    %c0_i32_0 = arith.constant 0 : i32
    %c0_i32_1 = arith.constant 0 : i32
    return %arg0, %c0_i32, %c0_i32_0 : i32, i32, i32
  }
  func.func @transform_1(%arg0: i32, %arg1: i32) -> (i32, i32, i32) {
    %c0_i32 = arith.constant 0 : i32
    %c0_i32_0 = arith.constant 0 : i32
    %c0_i32_1 = arith.constant 0 : i32
    return %arg1, %c0_i32, %c0_i32_0 : i32, i32, i32
  }
  func.func @transform_2(%arg0: i32, %arg1: i32) -> (i32, i32, i32) {
    %c0_i32 = arith.constant 0 : i32
    %c0_i32_0 = arith.constant 0 : i32
    %c0_i32_1 = arith.constant 0 : i32
    return %arg1, %c0_i32, %c0_i32_0 : i32, i32, i32
  }
  func.func @transform_3(%arg0: i32, %arg1: i32) -> (i32, i32, i32) {
    %c0_i32 = arith.constant 0 : i32
    %c0_i32_0 = arith.constant 0 : i32
    return %arg0, %c0_i32, %arg1 : i32, i32, i32
  }
  func.func @transform_4(%arg0: i32, %arg1: i32) -> (i32, i32, i32, i32) {
    %c0_i32 = arith.constant 0 : i32
    %c0_i32_0 = arith.constant 0 : i32
    %c0_i32_1 = arith.constant 0 : i32
    return %arg0, %arg1, %c0_i32, %c0_i32_0 : i32, i32, i32, i32
  }
}

</mosaic_0001>

<bundles_post_ra>
// kernel: tpu_custom_call.1
= control target key start
LH: loop header
LB: loop body
LE: loop exit
PB: predicated region body
PF: predicated region fallthrough
CT: control target
= control target key end

     0   :  { %s1949_s0 = inlined_call_operand.hbm [shape: f32[2,8,32], index: 0, kind: input, shape index: {}]   ;;  %s1950_s1 = inlined_call_operand.hbm [shape: f32[1,32,96], index: 1, kind: input, shape index: {}]   ;;  %s1951_s2 = inlined_call_operand.vmem [shape: f32[1,1,96], index: 2, kind: input, shape index: {}]   ;;  %s1952_s3 = inlined_call_operand.hbm [shape: f32[2,8,32], index: 3, kind: output, shape index: {0}]   ;;  %s1953_s4 = inlined_call_operand.hbm [shape: f32[2,4,8,8], index: 4, kind: output, shape index: {1}]  }
   0x1   :  { %1955 = sst [smem:[#allocation14_spill]] %s1950_s1 }
   0x2   :  { %10 = vsyncpa [#allocation3], 0 }
   0x3   :  { %12 = vsyncpa [#allocation3 + $0x1], 0 }
   0x4   :  { %13 = vsyncpa [#allocation6], 0 }
   0x5   :  { %14 = vsyncpa [#allocation4], 0 }
   0x6   :  { %16 = vsyncpa [#allocation4 + $0x1], 0 }
   0x7   :  { %17 = vsyncpa [#allocation9], 0 }
   0x8   :  { %19 = vsyncpa [#allocation9 + $0x1], 0  ;;  %s1659_s15 = smov 0   ;;  %s1661_s16 = smov 0  }
   0x9   :  { %s1663_s17 = smov 0   ;;  %s1665_s18 = smov 0  }
   0xa   :  { %s1667_s19 = smov 0   ;;  %s1669_s20 = smov 0  }
   0xb LB: > { %s1233_s21 = sadd.s32 4294967295, %s1615_s20   ;;  %s1234_s22 = sadd.s32 4294967294, %s1615_s20   ;;  %s1615_s20 = sphi %s1669_s20, %s25_s20   ;;  %s1611_s19 = sphi %s1667_s19, %s1973_s19   ;;  %s1607_s18 = sphi %s1665_s18, %s1972_s18   ;;  %s1603_s17 = sphi %s1663_s17, %s1971_s17   ;;  %s1599_s16 = sphi %s1661_s16, %s1970_s16   ;;  %s1595_s15 = sphi %s1659_s15, %s1969_s15  }
   0xc   : > { %p57_p0 = scmp.ne.s32.totalorder %s1599_s16, %s1595_s15  ;;  %p1693_p1 = scmp.eq.s32.totalorder %s1233_s21, 0 }
   0xd   : > { %p1697_p2 = scmp.eq.s32.totalorder %s1233_s21, 1  ;;  %p141_p3 = scmp.eq.s32.totalorder %s1234_s22, 1 }
   0xe   : > { %p1703_p4 = por %p1693_p1, %p57_p0  ;;  %p1235_p5 = scmp.ge.s32.totalorder %s1615_s20, 1 }
   0xf   : > { %p1708_p6 = por %p141_p3, %p57_p0  ;;  %p176_p7 = scmp.lt.s32.totalorder %s1615_s20, 3 }
  0x10   : > { %s1958_s25 = scalar_select %p1703_p4, 1, 0 }
  0x11   : > { %s1959_s26 = scalar_select %p1708_p6, 1, 0 }
  0x12   : > { %p1713_p8 = pnand %p1235_p5, %p176_p7  ;;  %s1617_s28 = smov [#allocation5]  }
  0x13   : > { %s191_s29 = sshll.u32 %s1617_s28, 4  ;;  %s37_s5 = sadd.s32 1, %s1611_s19  ;;  %s192_s29 = int_to_ptr.vmem [resolvable:$true] %s191_s29 }
  0x14   : > { %p1350_p9 = pneg %p1713_p8  ;;  %s1458_s6 = scalar_lea.vmem %s192_s29, 512 }
  0x15   : > { %p1459_p13 = scmp.ne.s32.totalorder %s192_s29, %s1458_s6  ;;  %p1466_p5 = scmp.lt.s32.totalorder %s192_s29, %s192_s29 }
  0x16   : > { %p1722_p11 = pnand %p1350_p9, %p1693_p1  ;;  %p1467_p7 = scmp.lt.s32.totalorder %s1458_s6, %s1458_s6 }
  0x18   : > { %p1449_p12 = pneg %p1722_p11  ;;  %p1468_p6 = por %p1467_p7, %p1466_p5 }
  0x1a   : > { %p1461_p0 = pnand %p1459_p13, %p1449_p12 }
  0x1c   : > { %p1462_p3 = pneg %p1461_p0 }
  0x1e   : > { %p1469_p4 = pnand %p1468_p6, %p1462_p3 }
  0x20   : > { %1472 = shalt.err (!%p1469_p4)
}
  0x21   : > { %s1618_s7 = smov 128   ;;  %s1619_s8 = smov 8  }
  0x22   : > { %s1962_s1 = sld [smem:[#allocation14_spill]]  ;;  %p39_p6 = scmp.ge.s32.totalorder %s37_s5, 2 }
  0x23   : > { %s44_s11 = sadd.s32 1, %s1603_s17  ;;  %p51_p4 = scmp.ne.s32.totalorder %s1603_s17, %s1599_s16 }
  0x24   : > { %p52_p9 = scmp.eq.s32.totalorder %s1615_s20, 0  ;;  %s1975_s5 = smov (%p39_p6, %s37_s5), 0 }
  0x25   : > { %p1746_p13 = por %p1697_p2, %p51_p4  ;;  %s41_s14 = ssub.s32 %s1611_s19, %s1975_s5 }
  0x26   : > { %p1740_p12 = por %p52_p9, %p51_p4  ;;  %p1366_p0 = scmp.lt.s32.totalorder %s1615_s20, 2 }
  0x27   : > { %s211_s21 = sand.u32 1, %s1603_s17  }
  0x28   : > { %1353 = dma.hbm_to_vmem [thread:$0]  (!%p1722_p11), %s1962_s1, 512, %s192_s29, [#allocation6], %s1618_s7, %s1618_s7, %s1619_s8  }
  0x29   : > { %p42_p11 = scmp.eq.s32.totalorder %s41_s14, 0  ;;  %s1239_s22 = sshll.u32 %s211_s21, 3 }
  0x2a   : > { %s1240_s29 = sshll.u32 %s1611_s19, 7  ;;  %s215_s8 = scalar_lea.vmem [#allocation2], %s1239_s22 }
  0x2b   : > { %s1755_s28 = scalar_select %p42_p11, %s1603_s17, %s44_s11  }
  0x2c   : > { %s220_s7 = scalar_lea.hbm %s1949_s0, %s1240_s29  ;;  %s222_s9 = sshll.u32 %s215_s8, 4  ;;  %s223_s9 = int_to_ptr.vmem [resolvable:$true] %s222_s9 }
  0x2d   : > { %p1763_p2 = pnand %p1366_p0, %p1740_p12  ;;  %s212_s10 = scalar_lea.sflag [#allocation3], %s211_s21 }
  0x2e   : > { %s1486_s14 = scalar_lea.vmem %s223_s9, 128  ;;  %s1620_s11 = smov [#allocation2]  }
  0x2f   : > { %p1475_p3 = pneg %p1763_p2  ;;  %p1487_p5 = scmp.ne.s32.totalorder %s223_s9, %s1486_s14 }
  0x30   : > { %s1491_s1 = sshll.u32 %s1620_s11, 4  ;;  %s1492_s1 = int_to_ptr.vmem [resolvable:$false] %s1491_s1 }
  0x31   : > { %p1489_p7 = pnand %p1487_p5, %p1475_p3  ;;  %s1493_s29 = scalar_lea.vmem %s1492_s1, 256 }
  0x32   : > { %p1494_p4 = scmp.lt.s32.totalorder %s223_s9, %s1492_s1  ;;  %p1495_p9 = scmp.lt.s32.totalorder %s1493_s29, %s1486_s14 }
  0x33   : > { %p1490_p6 = pneg %p1489_p7 }
  0x34   : > { %p1496_p11 = por %p1495_p9, %p1494_p4 }
  0x36   : > { %p1497_p10 = pnand %p1496_p11, %p1490_p6 }
  0x38   : > { %1500 = shalt.err (!%p1497_p10)
}
  0x39   : > { %1357 = dma.hbm_to_vmem [thread:$0]  (!%p1763_p2), %s220_s7, 128, %s223_s9, %s212_s10  }
  0x3a   : > { %231 = sbr.rel (%p1713_p8) target bundleno = 1348 (0x544), region = 32  ;;  %s1774_s12 = sand.u32 (!%p1713_p8), 1, %s1599_s16  }
  0x3b   : > { %s1242_s21 = sshll.u32 (!%p1713_p8), %s1774_s12, 3  ;;  %s234_s22 = scalar_lea.sflag (!%p1713_p8), [#allocation3], %s1774_s12 }
  0x3c   : > { %s237_s1 = scalar_lea.vmem (!%p1713_p8), [#allocation2], %s1242_s21  ;;  %p1966_p12 = scmp.ne.s32.totalorder (!%p1713_p8), %s1958_s25, 0 }
  0x3f   : > { %1578 = dma.done.wait (%p1966_p12), %s234_s22, 128  }
  0x40   : > { %1580 = vsyncadd (%p1966_p12), %s234_s22, 4294967168 }
  0x41   : > { %1582 = dma.done.wait (%p1693_p1), [#allocation6], 512  }
  0x42   : > { %1584 = vsyncadd (%p1693_p1), [#allocation6], 4294966784  ;;  %v1621_v0 = vmov 0.0   ;;  %vm1622_vm0 = vmmov 0   ;;  %v282_v1 = vld [vmem:[#allocation5 + $0x18] sm:$0xff]  ;;  %v281_v2 = vld [vmem:[#allocation5 + $0x10] sm:$0xff] }
  0x43   : > { %1289 = vmatprep.subr.mxu0 %v1621_v0  ;;  %1297 = vmatprep.mubr.msk.f32.mxu0 %vm1622_vm0, %v1621_v0  ;;  %v280_v3 = vld [vmem:[#allocation5 + $0x8] sm:$0xff]  ;;  %v279_v4 = vld [vmem:[#allocation5] sm:$0xff]  ;;  %v278_v5 = vld [vmem:[%s237_s1] sm:$0xff]  ;;  %vm290_vm1 = vcmask 261120   ;;  %s1623_s27 = smov 104   ;;  %s1624_s30 = smov 120  }
  0x44   : > { %1300 = vmatprep.subr.mxu1 %v1621_v0  ;;  %1302 = vmatprep.mubr.msk.f32.mxu1 %vm1622_vm0, %v1621_v0  ;;  %v1246_v6 = vld [vmem:[%s1951_s2] ss:$0 sm:$0xff]  ;;  %s1625_s6 = smov 96   ;;  %s1626_s7 = smov 112   ;;  %vm380_vm2 = vcmask 64512  }
  0x45   : > { %1290 = vmatpush3.msra.mxu0 %v282_v1  ;;  %s1627_s8 = smov 64   ;;  %s1245_s9 = sshll.u32 %s1774_s12, 5 }
  0x46   : > { %1291 = vmatprep.subr.mxu0 %v1621_v0  ;;  %s1849_s24 = scalar_lea.vmem [#allocation8], %s1245_s9  ;;  %s1267_s10 = sshll.u32 %s1607_s18, 9 }
  0x47   : > { %1292 = vmatpush3.msra.mxu0 %v281_v2  ;;  %s1092_s14 = sshll.u32 %s1849_s24, 4  ;;  %s1872_s22 = scalar_lea.hbm %s1953_s4, %s1267_s10  ;;  %s1874_s14 = int_to_ptr.vmem [resolvable:$true] %s1092_s14 }
  0x48   : > { %1293 = vmatprep.subr.mxu0 %v1621_v0  ;;  %s1063_s1 = scalar_lea.sflag [#allocation9], %s1774_s12  ;;  %s1501_s23 = scalar_lea.vmem %s1874_s14, 512 }
  0x49   : > { %1294 = vmatpush3.msra.mxu0 %v280_v3  ;;  %p1502_p1 = scmp.ne.s32.totalorder %s1874_s14, %s1501_s23  ;;  %s1628_s25 = smov [#allocation8]  }
  0x4a   : > { %1295 = vmatprep.subr.mxu0 %v1621_v0 }
  0x4b   : > { %1296 = vmatpush3.msra.mxu0 %v279_v4  ;;  %p1503_p8 = pnand %p1502_p1, %p1746_p13 }
  0x4c   : > { %1298 = vmatmul.mubr.msk.f32.vlgmr.msra.gmra.mxu0 %vm290_vm1, %v278_v5  ;;  %1310 = vmatprep.subr.mxu0 %v1621_v0 }
  0x4d   : > { %1312 = vmatprep.mubr.msk.f32.mxu0 %vm1622_vm0, %v1621_v0  ;;  %p1504_p10 = pneg %p1503_p8 }
 0x10c   : > { %v360_v7 = vpop.f32.mrf.mxu0 }
 0x10d   : > { %v361_v8 = vadd.f32 %v1246_v6, %v360_v7 }
 0x10e   : > { %v1299_v9 = vpop.f32.mrf.mxu0 }
 0x10f   : > { %371 = vrot.lane.b32.xlu1 %v361_v8, %s1623_s27  ;;  %365 = vrot.lane.b32.xlu0 %v361_v8, %s1624_s30  ;;  %v374_v14 = vmul.f32 0.17677669, %v361_v8  ;;  %s1505_s27 = sshll.u32 %s1628_s25, 4  ;;  %s1506_s27 = int_to_ptr.vmem [resolvable:$false] %s1505_s27 }
 0x110   : > { %s1507_s30 = scalar_lea.vmem %s1506_s27, 1024  ;;  %p1508_p0 = scmp.lt.s32.totalorder %s1874_s14, %s1506_s27 }
 0x111   : > { %p1509_p2 = scmp.lt.s32.totalorder %s1507_s30, %s1501_s23 }
 0x113   : > { %378 = vrot.lane.b32.xlu1 %v361_v8, %s1625_s6  ;;  %368 = vrot.lane.b32.xlu0 %v361_v8, %s1626_s7  ;;  %p1510_p3 = por %p1509_p2, %p1508_p0 }
 0x115   : > { %p1511_p5 = pnand %p1510_p3, %p1504_p10 }
 0x181   : > { %v1804_v10 = vpop.permute.xlu1 %371  ;;  %v366_v11 = vpop.permute.xlu0 %365 }
 0x182   : > { %456 = vrot.lane.b32.xlu0 %v366_v11, %s1625_s6  ;;  %v375_v16 = vmul.f32 0.17677669, %v366_v11  ;;  %v377_v19 = vmul.f32 0.17677669, %v1804_v10 }
 0x185   : > { %v379_v12 = vpop.permute.xlu1 %378  ;;  %v1806_v13 = vpop.permute.xlu0 %368 }
 0x186   : > { %1301 = vmatpush3.xpose.msk.msra.mxu1 %vm380_vm2, %v379_v12  ;;  %610 = vrot.lane.b32.xlu0 %v1804_v10, %s1625_s6  ;;  %v376_v20 = vmul.f32 0.17677669, %v1806_v13 }
 0x187   : > { %533 = vrot.lane.b32.xlu1 %v1806_v13, %s1625_s6  ;;  %1305 = vmatprep.subr.mxu1 %v1621_v0 }
 0x189   : > { %1303 = vmatmul.mubr.msk.f32.vlgmr.msra.gmra.mxu1 %vm380_vm2, %v374_v14 }
 0x18a   : > { %1307 = vmatprep.mubr.msk.f32.mxu1 %vm1622_vm0, %v1621_v0 }
 0x1f4   : > { %v457_v15 = vpop.permute.xlu0 %456 }
 0x1f5   : > { %1306 = vmatpush3.xpose.msk.msra.mxu1 %vm380_vm2, %v457_v15 }
 0x1f6   : > { %1315 = vmatprep.subr.mxu1 %v1621_v0 }
 0x1f8   : > { %v611_v17 = vpop.permute.xlu0 %610  ;;  %1308 = vmatmul.mubr.msk.f32.vlgmr.msra.gmra.mxu1 %vm380_vm2, %v375_v16 }
 0x1f9   : > { %v534_v18 = vpop.permute.xlu1 %533  ;;  %1316 = vmatpush3.xpose.msk.msra.mxu1 %vm380_vm2, %v611_v17  ;;  %1317 = vmatprep.mubr.msk.f32.mxu1 %vm1622_vm0, %v1621_v0 }
 0x1fa   : > { %1311 = vmatpush3.xpose.msk.msra.mxu0 %vm380_vm2, %v534_v18  ;;  %1325 = vmatprep.subr.mxu1 %v1621_v0 }
 0x1fb   : > { %1320 = vmatprep.subr.mxu0 %v1621_v0 }
 0x1fc   : > { %1318 = vmatmul.mubr.msk.f32.vlgmr.msra.gmra.mxu1 %vm380_vm2, %v377_v19 }
 0x1fd   : > { %1313 = vmatmul.mubr.msk.f32.vlgmr.msra.gmra.mxu0 %vm380_vm2, %v376_v20  ;;  %1327 = vmatprep.mubr.msk.f32.mxu1 %vm1622_vm0, %v1621_v0 }
 0x1fe   : > { %1322 = vmatprep.mubr.msk.f32.mxu0 %vm1622_vm0, %v1621_v0 }
 0x249   : > { %v452_v21 = vpop.f32.mrf.mxu1 }
 0x24a   : > { %v687_v22 = vsel %vm380_vm2, %v452_v21, -inf }
 0x24b   : > { %688 = vmax.xlane.f32.xlu1 %v687_v22  ;;  %v1304_v23 = vpop.f32.mrf.mxu1 }
 0x2b8   : > { %v529_v24 = vpop.f32.mrf.mxu1 }
 0x2b9   : > { %v690_v25 = vsel %vm380_vm2, %v529_v24, -inf }
 0x2ba   : > { %691 = vmax.xlane.f32.xlu0 %v690_v25  ;;  %v1309_v26 = vpop.f32.mrf.mxu1 }
 0x2bc   : > { %v683_v27 = vpop.f32.mrf.mxu1 }
 0x2bd   : > { %v606_v28 = vpop.f32.mrf.mxu0  ;;  %v696_v29 = vsel %vm380_vm2, %v683_v27, -inf }
 0x2be   : > { %697 = vmax.xlane.f32.xlu1 %v696_v29  ;;  %v1319_v30 = vpop.f32.mrf.mxu1  ;;  %v693_v31 = vsel %vm380_vm2, %v606_v28, -inf }
 0x2bf   : > { %694 = vmax.xlane.f32.xlu0 %v693_v31  ;;  %v1314_v32 = vpop.f32.mrf.mxu0 }
 0x2cf   : > { %811 = vrot.lane.b32.xlu1 %v366_v11, %s1627_s8 }
 0x2d4   : > { %v689_v33 = vpop.xlane.xlu1 %688 }
 0x2d5   : > { %735 = vrot.lane.b32.xlu0 %v361_v8, %s1627_s8  ;;  %v699_v34 = vsub.f32 %v452_v21, %v689_v33 }
 0x2d7   : > { %v703_v35 = vmul.f32 1.442695, %v699_v34 }
 0x2d9   : > { %1431 = vpow2.f32 %v703_v35 }
 0x2e6   : > { %v1432_v36 = vpop.eup %1431 }
 0x2e7   : > { %v711_v37 = vsel %vm380_vm2, %v1432_v36, 0.0 }
 0x2f4   : > { %712 = vadd.xlane.f32.xlu0 %v711_v37 }
 0x343   : > { %v692_v38 = vpop.xlane.xlu0 %691 }
 0x344   : > { %v700_v39 = vsub.f32 %v529_v24, %v692_v38 }
 0x346   : > { %v705_v40 = vmul.f32 1.442695, %v700_v39 }
 0x347   : > { %v698_v41 = vpop.xlane.xlu1 %697 }
 0x348   : > { %1433 = vpow2.f32 %v705_v40  ;;  %v702_v42 = vsub.f32 %v683_v27, %v698_v41  ;;  %v695_v43 = vpop.xlane.xlu0 %694 }
 0x349   : > { %v701_v44 = vsub.f32 %v606_v28, %v695_v43 }
 0x34a   : > { %v709_v45 = vmul.f32 1.442695, %v702_v42 }
 0x34b   : > { %v707_v46 = vmul.f32 1.442695, %v701_v44  ;;  %v812_v47 = vpop.permute.xlu1 %811 }
 0x34c   : > { %1435 = vpow2.f32 %v709_v45  ;;  %v736_v48 = vpop.permute.xlu0 %735  ;;  %1326 = vmatpush3.msra.mxu1 %v812_v47 }
 0x34d   : > { %1437 = vpow2.f32 %v707_v46  ;;  %1321 = vmatpush3.msra.mxu0 %v736_v48  ;;  %1335 = vmatprep.subr.mxu1 %v1621_v0 }
 0x34e   : > { %1330 = vmatprep.subr.mxu0 %v1621_v0 }
 0x355   : > { %v1434_v49 = vpop.eup %1433 }
 0x356   : > { %v714_v50 = vsel %vm380_vm2, %v1434_v49, 0.0 }
 0x357   : > { %715 = vadd.xlane.f32.xlu1 %v714_v50 }
 0x359   : > { %v1436_v51 = vpop.eup %1435 }
 0x35a   : > { %v1438_v52 = vpop.eup %1437  ;;  %v720_v53 = vsel %vm380_vm2, %v1436_v51, 0.0 }
 0x35b   : > { %721 = vadd.xlane.f32.xlu1 %v720_v53  ;;  %v717_v54 = vsel %vm380_vm2, %v1438_v52, 0.0 }
 0x35c   : > { %718 = vadd.xlane.f32.xlu0 %v717_v54 }
 0x36c   : > { %887 = vrot.lane.b32.xlu1 %v1806_v13, %s1627_s8 }
 0x372   : > { %963 = vrot.lane.b32.xlu0 %v1804_v10, %s1627_s8 }
 0x37d   : > { %v713_v55 = vpop.xlane.xlu0 %712 }
 0x37e   : > { %1439 = vrcp.f32 %v713_v55 }
 0x38b   : > { %v1440_v56 = vpop.eup %1439 }
 0x38c   : > { %v727_v57 = vmul.f32 %v1440_v56, %v1432_v36 }
 0x38e   : > { %731 = vst.msk [vmem:[%s1849_s24] sm:$0xff] %vm380_vm2, %v727_v57  ;;  %1323 = vmatmul.mubr.msk.f32.vlgmr.msra.gmra.mxu0 %vm380_vm2, %v727_v57 }
 0x38f   : > { %1332 = vmatprep.mubr.msk.f32.mxu0 %vm1622_vm0, %v1621_v0 }
 0x3e0   : > { %v716_v58 = vpop.xlane.xlu1 %715 }
 0x3e1   : > { %1441 = vrcp.f32 %v716_v58 }
 0x3e4   : > { %v722_v59 = vpop.xlane.xlu1 %721 }
 0x3e5   : > { %1443 = vrcp.f32 %v722_v59  ;;  %v719_v60 = vpop.xlane.xlu0 %718 }
 0x3e6   : > { %1445 = vrcp.f32 %v719_v60 }
 0x3e8   : > { %v888_v61 = vpop.permute.xlu1 %887 }
 0x3e9   : > { %1331 = vmatpush3.msra.mxu0 %v888_v61  ;;  %v964_v1 = vpop.permute.xlu0 %963 }
 0x3ee   : > { %v1442_v62 = vpop.eup %1441 }
 0x3ef   : > { %v728_v63 = vmul.f32 %v1442_v62, %v1434_v49 }
 0x3f1   : > { %732 = vst.msk [vmem:[%s1849_s24 + $0x8] sm:$0xff] %vm380_vm2, %v728_v63  ;;  %1328 = vmatmul.mubr.msk.f32.vlgmr.msra.gmra.mxu1 %vm380_vm2, %v728_v63 }
 0x3f2   : > { %v1444_v2 = vpop.eup %1443  ;;  %1336 = vmatpush3.msra.mxu1 %v964_v1  ;;  %1337 = vmatprep.mubr.msk.f32.mxu1 %vm1622_vm0, %v1621_v0 }
 0x3f3   : > { %v1446_v3 = vpop.eup %1445  ;;  %v730_v4 = vmul.f32 %v1444_v2, %v1436_v51 }
 0x3f4   : > { %v729_v5 = vmul.f32 %v1446_v3, %v1438_v52 }
 0x3f5   : > { %734 = vst.msk [vmem:[%s1849_s24 + $0x18] sm:$0xff] %vm380_vm2, %v730_v4  ;;  %1338 = vmatmul.mubr.msk.f32.vlgmr.msra.gmra.mxu1 %vm380_vm2, %v730_v4 }
 0x3f6   : > { %733 = vst.msk [vmem:[%s1849_s24 + $0x10] sm:$0xff] %vm380_vm2, %v729_v5  ;;  %1333 = vmatmul.mubr.msk.f32.vlgmr.msra.gmra.mxu0 %vm380_vm2, %v729_v5 }
 0x44e   : > { %v807_v6 = vpop.f32.mrf.mxu0 }
 0x450   : > { %v1324_v7 = vpop.f32.mrf.mxu0 }
 0x4b1   : > { %v883_v0 = vpop.f32.mrf.mxu1 }
 0x4b2   : > { %1514 = shalt.err (!%p1511_p5)
}
 0x4b3   : > { %s1515_s6 = scalar_lea.hbm %s1872_s22, 512  ;;  %s1519_s9 = scalar_lea.hbm %s1953_s4, 1024 }
 0x4b4   : > { %p1516_p7 = scmp.ne.s32.totalorder %s1872_s22, %s1515_s6  ;;  %p1520_p9 = scmp.lt.s32.totalorder %s1872_s22, %s1953_s4 }
 0x4b5   : > { %p1521_p11 = scmp.lt.s32.totalorder %s1519_s9, %s1515_s6 }
 0x4b6   : > { %p1517_p6 = pnand %p1516_p7, %p1746_p13 }
 0x4b7   : > { %p1522_p12 = por %p1521_p11, %p1520_p9 }
 0x4b8   : > { %p1518_p4 = pneg %p1517_p6 }
 0x4ba   : > { %p1523_p1 = pnand %p1522_p12, %p1518_p4 }
 0x4bc   : > { %1526 = shalt.err (!%p1523_p1)
}
 0x4bd   : > { %s1629_s11 = smov 128   ;;  %s1630_s29 = smov 8   ;;  %v1329_v8 = vpop.f32.mrf.mxu1  ;;  %v959_v10 = vpop.f32.mrf.mxu0  ;;  %vm1052_vm3 = vcmask 130048   ;;  %vm1054_vm4 = vcmask 195584  }
 0x4be   : > { %1347 = dma.vmem_to_hbm [thread:$0]  (%p1746_p13), %s1874_s14, 512, %s1872_s22, %s1063_s1, %s1629_s11, %s1629_s11, %s1630_s29  }
 0x4bf   : > { %1040 = vrot.lane.b32.xlu1 %v883_v0, %s1630_s29  ;;  %v1035_v9 = vpop.f32.mrf.mxu1  ;;  %s1631_s23 = smov 24   ;;  %s1632_s25 = smov 16   ;;  %v1334_v12 = vpop.f32.mrf.mxu0 }
 0x4c0   : > { %1044 = vrot.lane.b32.xlu0 %v959_v10, %s1632_s25  ;;  %s1262_s27 = sshll.u32 %s1607_s18, 7  ;;  %s266_s30 = scalar_lea.vmem [#allocation7], %s1242_s21 }
 0x4c1   : > { %v1339_v11 = vpop.f32.mrf.mxu1  ;;  %s1077_s6 = sshll.u32 %s266_s30, 4  ;;  %s1906_s1 = scalar_lea.hbm %s1952_s3, %s1262_s27  ;;  %s1078_s6 = int_to_ptr.vmem [resolvable:$true] %s1077_s6 }
 0x4c2   : > { %s1058_s7 = scalar_lea.sflag [#allocation4], %s1774_s12  ;;  %s1527_s18 = scalar_lea.vmem %s1078_s6, 128 }
 0x4c3   : > { %1048 = vrot.lane.b32.xlu1 %v1035_v9, %s1631_s23  ;;  %p1528_p8 = scmp.ne.s32.totalorder %s1078_s6, %s1527_s18  ;;  %s1633_s21 = smov [#allocation7]  }
 0x4c4   : > { %s1531_s8 = sshll.u32 %s1633_s21, 4  ;;  %s1532_s8 = int_to_ptr.vmem [resolvable:$false] %s1531_s8 }
 0x4c5   : > { %p1529_p10 = pnand %p1528_p8, %p1746_p13  ;;  %s1533_s9 = scalar_lea.vmem %s1532_s8, 256 }
 0x4c6   : > { %p1534_p2 = scmp.lt.s32.totalorder %s1078_s6, %s1532_s8  ;;  %p1535_p3 = scmp.lt.s32.totalorder %s1533_s9, %s1527_s18 }
 0x4c7   : > { %p1530_p0 = pneg %p1529_p10 }
 0x4c8   : > { %p1536_p5 = por %p1535_p3, %p1534_p2 }
 0x4ca   : > { %p1537_p7 = pnand %p1536_p5, %p1530_p0 }
 0x531   : > { %v1041_v13 = vpop.permute.xlu1 %1040 }
 0x532   : > { %v1051_v15 = vsel %vm380_vm2, %v807_v6, %v1041_v13  ;;  %v1045_v16 = vpop.permute.xlu0 %1044 }
 0x533   : > { %v1053_v17 = vsel %vm1052_vm3, %v1051_v15, %v1045_v16 }
 0x535   : > { %v1049_v14 = vpop.permute.xlu1 %1048 }
 0x536   : > { %v1055_v18 = vsel %vm1054_vm4, %v1053_v17, %v1049_v14 }
 0x537   : > { %1056 = vst.msk [vmem:[%s266_s30] sm:$0xff] %vm290_vm1, %v1055_v18 }
 0x538   : > { %1540 = shalt.err (!%p1537_p7)
}
 0x539   : > { %s1541_s24 = scalar_lea.hbm %s1906_s1, 128  ;;  %s1545_s11 = scalar_lea.hbm %s1952_s3, 256 }
 0x53a   : > { %p1542_p6 = scmp.ne.s32.totalorder %s1906_s1, %s1541_s24  ;;  %p1546_p11 = scmp.lt.s32.totalorder %s1906_s1, %s1952_s3 }
 0x53b   : > { %p1547_p12 = scmp.lt.s32.totalorder %s1545_s11, %s1541_s24 }
 0x53c   : > { %p1543_p4 = pnand %p1542_p6, %p1746_p13 }
 0x53d   : > { %p1548_p1 = por %p1547_p12, %p1546_p11 }
 0x53e   : > { %p1544_p9 = pneg %p1543_p4 }
 0x540   : > { %p1549_p8 = pnand %p1548_p1, %p1544_p9 }
 0x542   : > { %1552 = shalt.err (!%p1549_p8)
}
 0x543   : > { %1346 = dma.vmem_to_hbm [thread:$0]  (%p1746_p13), %s1078_s6, 128, %s1906_s1, %s1058_s7  }
 0x544 PF: > { %s1107_s25 = sand.u32 1, %s1595_s15   ;;  %p1967_p10 = scmp.ne.s32.totalorder %s1959_s26, 0 }
 0x545   : > { %p1968_p0 = scmp.ge.s32.totalorder %s1615_s20, 2  ;;  %s1108_s27 = scalar_lea.sflag [#allocation4], %s1107_s25 }
 0x547   : > { %p1359_p2 = pnand %p1968_p0, %p1967_p10 }
 0x549   : > { %p1360_p3 = pneg %p1359_p2 }
 0x54b   : > { %1586 = dma.done.wait (%p1360_p3), %s1108_s27, 128  }
 0x54c   : > { %1588 = vsyncadd (%p1360_p3), %s1108_s27, 4294967168  ;;  %s1117_s30 = scalar_lea.sflag [#allocation9], %s1107_s25 }
 0x54d   : > { %1590 = dma.done.wait (%p1360_p3), %s1117_s30, 512  }
 0x54e   : > { %1592 = vsyncadd (%p1360_p3), %s1117_s30, 4294966784  ;;  %s25_s20 = sadd.s32 1, %s1615_s20   ;;  %s1969_s15 = smov %s1599_s16 }
 0x54f   : > { %p22_p5 = scmp.ge.s32.totalorder %s25_s20, 4   ;;  %s1970_s16 = smov %s1603_s17 }
 0x550   : > { %s1971_s17 = smov %s1755_s28  ;;  %s1972_s18 = smov %s1611_s19 }
 0x551   : > { %s1973_s19 = smov %s1975_s5  ;;  %24 = sbr.rel (!%p22_p5) target bundleno = 11 (0xb), region = 102 }
 0x556   :  { %1122 = vsyncpa [#allocation3], 1 }
 0x557   :  { %1124 = vsyncpa [#allocation3 + $0x1], 1 }
 0x558   :  { %1125 = vsyncpa [#allocation6], 1 }
 0x559   :  { %1126 = vsyncpa [#allocation4], 1 }
 0x55a   :  { %1128 = vsyncpa [#allocation4 + $0x1], 1 }
 0x55b   :  { %1129 = vsyncpa [#allocation9], 1 }
 0x55c   :  { %1131 = vsyncpa [#allocation9 + $0x1], 1 }

</bundles_post_ra>
